<compile_context>
chip_gen: v6e
topology: v6e:2x2x1
jax: 0.10.0
libtpu: 0.0.40
codegen_flags: <defaults>
</compile_context>

<pallas_src>
import functools

import jax
import jax.numpy as jnp
from jax import lax
from jax.experimental import pallas as pl
from jax.experimental.pallas import tpu as pltpu

BN_EPS = 1e-5
RESIDUAL_FACTOR = 1.0
_INV_SQRT2 = 0.7071067811865476


def _round_up(x, m):
    return ((x + m - 1) // m) * m


def _pick_tn(fout_p):
    """Prefer 256-wide N tiles, but keep >=2 Fout tiles when possible (v7x dual-TC)."""
    if fout_p % 256 == 0:
        if fout_p // 256 >= 2:
            return 256
        return 128  # Fout_p == 256 -> split into two 128 tiles so both TCs get work
    return 128


def _vmem_footprint(batch, fin_p, tn, tk, x_resident, wc_bufs):
    bytes_x = 2 * batch * (fin_p if x_resident else tk) * 2       # bf16, double-buffered
    bytes_wc = wc_bufs * tk * (2 * tn) * 2                        # bf16 weight stream
    bytes_pkd = 2 * 8 * tn * 4                                    # packed params
    bytes_out = 2 * batch * tn * 4                                # f32 output
    bytes_acc = batch * (2 * tn) * 4                              # f32 accumulator
    return bytes_x + bytes_wc + bytes_pkd + bytes_out + bytes_acc


def _ordered_block_kernel(x_ref, wc_ref, pkd_ref, o_ref, acc_ref, *,
                          inv_b, tk, x_resident):
    """One (Fout-tile j, K-tile k) grid step.

    x_ref   : [B, Fin_p] (resident) or [B, tk] (tiled), bf16
    wc_ref  : [tk, 2*tn] bf16 : cols [0:tn) masked weight^T, cols [tn:2tn) 0/1 conn mask^T
    pkd_ref : [8, tn] f32 : rows 0=bias, 1=gamma, 2=beta, 3=inv_counts
    o_ref   : [B, tn] f32
    acc_ref : [B, 2*tn] f32 VMEM accumulator, persists across K steps
    """
    k = pl.program_id(1)

    @pl.when(k == 0)
    def _init():
        acc_ref[...] = jnp.zeros_like(acc_ref)

    if x_resident:
        start = pl.multiple_of(k * tk, tk)
        xk = x_ref[:, pl.ds(start, tk)]
    else:
        xk = x_ref[...]

    # Natural [M,K]x[K,N] MXU pass, f32 accumulation; yields both the linear output
    # (first tn columns) and the residual input aggregate (last tn columns).
    acc_ref[...] += jnp.dot(xk, wc_ref[...], preferred_element_type=jnp.float32)

    @pl.when(k == pl.num_programs(1) - 1)
    def _finalize():
        acc = acc_ref[...]
        tn = acc.shape[1] // 2
        p = pkd_ref[...]
        bias, gamma, beta, inv_cnt = p[0:1, :], p[1:2, :], p[2:3, :], p[3:4, :]

        z = acc[:, :tn] + bias                       # OrderedLinear (mask folded into W)
        res = acc[:, tn:] * inv_cnt                  # OrderedResidual1D: mean of allowed inputs

        # Exact (erf) GELU, matching torch.nn.GELU() default.
        z = 0.5 * z * (1.0 + lax.erf(z * _INV_SQRT2))

        # BatchNorm1d training mode (biased batch statistics), two-pass variance.
        mean = jnp.sum(z, axis=0, keepdims=True) * inv_b
        zc = z - mean
        var = jnp.sum(zc * zc, axis=0, keepdims=True) * inv_b
        z = zc * lax.rsqrt(var + BN_EPS)
        z = z * gamma + beta

        # Ordered residual added after BN.
        o_ref[...] = z + RESIDUAL_FACTOR * res


def ordered_block_forward(x, w, b, mask_lin, gamma, beta, res_mask):
    """Fused OrderedBlock forward.

    x [B, Fin], w [Fout, Fin], b/gamma/beta [1, Fout], mask_lin/res_mask [Fout, Fin]
    (0/1 connectivity masks). The batch axis is never tiled so BatchNorm statistics
    are full-batch.
    """
    B, Fin = x.shape
    Fout = w.shape[0]

    Fin_p = _round_up(Fin, 128)
    Fout_p = _round_up(Fout, 128)
    pad_o, pad_i = Fout_p - Fout, Fin_p - Fin

    # ---- tile selection (B-aware VMEM budget) -------------------------------
    tn = _pick_tn(Fout_p)
    x_resident = (2 * B * Fin_p * 2) <= (4 << 20)   # keep x fully in VMEM if a few MiB
    budget = 24 << 20
    tk = 128
    for cand in (2048, 1024, 512, 256, 128):
        if Fin_p % cand == 0 and _vmem_footprint(B, Fin_p, tn, cand, x_resident, 3) <= budget:
            tk = cand
            break
    if _vmem_footprint(B, Fin_p, tn, tk, x_resident, 3) > budget:
        # Last resort for very large B: smallest tiles, stream x.
        tn, tk, x_resident = 128, 128, False

    nj, nk = Fout_p // tn, Fin_p // tk
    footprint = _vmem_footprint(B, Fin_p, tn, tk, x_resident, 3)
    vmem_limit = min(max(int(footprint * 1.3) + (4 << 20), 32 << 20), 56 << 20)

    # ---- operand packing ----------------------------------------------------
    # Fold ordering mask into W, pad, interleave [W_masked ; conn] per Fout tile,
    # then transpose ONCE in the wrapper -> [Fin_p, 2*Fout_p] (K on sublanes, N on lanes).
    w_masked = jnp.pad(w * mask_lin, ((0, pad_o), (0, pad_i)))
    conn_p = jnp.pad(res_mask, ((0, pad_o), (0, pad_i)))
    wc = jnp.stack([w_masked, conn_p], axis=0)                     # [2, Fout_p, Fin_p]
    wc = (wc.reshape(2, nj, tn, Fin_p)
            .transpose(1, 0, 2, 3)
            .reshape(2 * Fout_p, Fin_p))
    wc_t = wc.T.astype(jnp.bfloat16)                               # [Fin_p, 2*Fout_p]

    x_p = jnp.pad(x, ((0, 0), (0, pad_i))).astype(jnp.bfloat16)

    counts = jnp.maximum(res_mask.sum(axis=1), 1.0)                # [Fout]
    pkd = jnp.zeros((8, Fout_p), jnp.float32)
    pkd = pkd.at[0, :Fout].set(b[0].astype(jnp.float32))
    pkd = pkd.at[1, :Fout].set(gamma[0].astype(jnp.float32))
    pkd = pkd.at[2, :Fout].set(beta[0].astype(jnp.float32))
    pkd = pkd.at[3, :Fout].set(1.0 / counts)

    # ---- specs --------------------------------------------------------------
    if x_resident:
        x_spec = pl.BlockSpec((B, Fin_p), lambda j, k: (0, 0))     # DMA'd once, stays resident
    else:
        x_spec = pl.BlockSpec((B, tk), lambda j, k: (0, k))

    if nj * nk >= 3:
        wc_spec = pl.BlockSpec((tk, 2 * tn), lambda j, k: (k, j),
                               pipeline_mode=pl.Buffered(3))
    else:
        wc_spec = pl.BlockSpec((tk, 2 * tn), lambda j, k: (k, j))

    kernel = functools.partial(_ordered_block_kernel, inv_b=1.0 / B, tk=tk,
                               x_resident=x_resident)

    out = pl.pallas_call(
        kernel,
        out_shape=jax.ShapeDtypeStruct((B, Fout_p), jnp.float32),
        grid_spec=pltpu.PrefetchScalarGridSpec(
            num_scalar_prefetch=0,
            grid=(nj, nk),
            in_specs=[
                x_spec,                                            # x (bf16)
                wc_spec,                                           # [W_masked ; conn]^T tile
                pl.BlockSpec((8, tn), lambda j, k: (0, j)),        # packed bias/gamma/beta/inv_cnt
            ],
            out_specs=pl.BlockSpec((B, tn), lambda j, k: (0, j)),
            scratch_shapes=[pltpu.VMEM((B, 2 * tn), jnp.float32)],
        ),
        compiler_params=pltpu.CompilerParams(
            dimension_semantics=("parallel", "arbitrary"),
            vmem_limit_bytes=vmem_limit,
        ),
    )(x_p, wc_t, pkd)

    return out[:, :Fout]


def build_params(in_features, out_features, key):
    """Deterministic synthetic parameters mirroring OrderedBlock.__init__ shapes."""
    kw, kb = jax.random.split(key)

    # MADE-style orderings: inputs labeled 0..Fin-1, outputs assigned cyclically.
    in_ordering = jnp.arange(in_features, dtype=jnp.int32)
    out_ordering = jnp.arange(out_features, dtype=jnp.int32) % in_features

    # auto_connection=True -> connection allowed when out_order >= in_order.
    conn = (out_ordering[:, None] >= in_ordering[None, :]).astype(jnp.float32)  # [Fout, Fin]

    # Linear parameters (torch.nn.Linear shapes / init bounds).
    bound = 1.0 / jnp.sqrt(jnp.float32(in_features))
    w = jax.random.uniform(kw, (out_features, in_features), jnp.float32, -bound, bound)
    b = jax.random.uniform(kb, (1, out_features), jnp.float32, -bound, bound)

    # BatchNorm1d affine parameters (PyTorch defaults).
    gamma = jnp.ones((1, out_features), jnp.float32)
    beta = jnp.zeros((1, out_features), jnp.float32)

    # TODO(synk): OrderedResidual1D source unavailable; assuming residual = mean of
    # ordering-allowed inputs per output (scale=True, masked_connections=True),
    # scaled by residual_factor and added after BN. Residual uses the same
    # connectivity mask as the linear (same orderings after reorder()).
    return w, b, conn, gamma, beta, conn


def _reference(x, w, b, mask_lin, gamma, beta, res_mask):
    """Pure-JAX reference with the same bf16 casts as the kernel."""
    xb = x.astype(jnp.bfloat16).astype(jnp.float32)
    wm = (w * mask_lin).astype(jnp.bfloat16).astype(jnp.float32)
    cm = res_mask.astype(jnp.bfloat16).astype(jnp.float32)         # 0/1 -> exact in bf16
    inv_counts = 1.0 / jnp.maximum(res_mask.sum(axis=1), 1.0)

    z = xb @ wm.T + b
    z = 0.5 * z * (1.0 + lax.erf(z * _INV_SQRT2))
    mean = jnp.mean(z, axis=0, keepdims=True)
    var = jnp.mean((z - mean) ** 2, axis=0, keepdims=True)
    z = (z - mean) * lax.rsqrt(var + BN_EPS) * gamma + beta
    res = (xb @ cm.T) * inv_counts[None, :]
    return z + RESIDUAL_FACTOR * res


if __name__ == "__main__":
    # TODO(synk): BatchNorm1d running_mean/running_var updates are not produced
    # (pure fused forward only).
    B, Fin, Fout = 8, 48, 40   # small, non-multiples of 128 to exercise wrapper padding
    key = jax.random.PRNGKey(0)
    kx, kp = jax.random.split(key)

    x = jax.random.normal(kx, (B, Fin), jnp.float32)
    w, b, mask_lin, gamma, beta, res_mask = build_params(Fin, Fout, kp)

    out = ordered_block_forward(x, w, b, mask_lin, gamma, beta, res_mask)
    out = jax.block_until_ready(out)

    ref = _reference(x, w, b, mask_lin, gamma, beta, res_mask)
    assert out.shape == (B, Fout) and out.dtype == jnp.float32
    assert jnp.allclose(out, ref, rtol=1e-2, atol=1e-2), float(jnp.max(jnp.abs(out - ref)))
    print("KERNEL_OK")
</pallas_src>

<mosaic_0001>
module attributes {stable_mosaic.version = 11 : i64} {
  func.func @_ordered_block_kernel(%arg0: i32, %arg1: i32, %arg2: memref<8x128xbf16, #tpu.memory_space<vmem>>, %arg3: memref<128x256xbf16, #tpu.memory_space<vmem>>, %arg4: memref<8x128xf32, #tpu.memory_space<vmem>>, %arg5: memref<8x128xf32, #tpu.memory_space<vmem>>, %arg6: memref<8x256xf32, #tpu.memory_space<vmem>>) attributes {dimension_semantics = [#tpu.dimension_semantics<parallel>, #tpu.dimension_semantics<arbitrary>], iteration_bounds = array<i64: 1, 1>, scalar_prefetch = 0 : i64, scratch_operands = 1 : i64, tpu.core_type = #tpu.core_type<tc>, window_params = [{pipeline_mode = #tpu.pipeline_mode<synchronous>, transform_indices = @transform_0, window_bounds = array<i64: 8, 128>}, {transform_indices = @transform_1, window_bounds = array<i64: 128, 256>}, {transform_indices = @transform_2, window_bounds = array<i64: 8, 128>}, {transform_indices = @transform_3, window_bounds = array<i64: 8, 128>}]} {
    %c0_i32 = arith.constant 0 : i32
    %0 = arith.cmpi eq, %arg1, %c0_i32 : i32
    %1 = arith.extui %0 : i1 to i32
    %c0_i32_0 = arith.constant 0 : i32
    %2 = arith.cmpi ne, %1, %c0_i32_0 : i32
    scf.if %2 {
      %cst_9 = arith.constant 0.000000e+00 : f32
      %15 = vector.broadcast %cst_9 : f32 to vector<8x256xf32>
      %c0_10 = arith.constant 0 : index
      %c0_11 = arith.constant 0 : index
      %16 = vector.load %arg6[%c0_10, %c0_11] : memref<8x256xf32, #tpu.memory_space<vmem>>, vector<8x256xf32>
      tpu.vector_store %arg6[%c0_10, %c0_11], %15 {strides = array<i32>} : memref<8x256xf32, #tpu.memory_space<vmem>>, vector<8x256xf32>,
    } else {
    }
    %c128_i32 = arith.constant 128 : i32
    %3 = arith.muli %arg1, %c128_i32 : i32
    %4 = tpu.assume_multiple %3, 128 : i32
    %c0 = arith.constant 0 : index
    %5 = arith.index_cast %4 : i32 to index
    %6 = vector.load %arg2[%c0, %5] : memref<8x128xbf16, #tpu.memory_space<vmem>>, vector<8x128xbf16>
    %c0_1 = arith.constant 0 : index
    %c0_2 = arith.constant 0 : index
    %7 = vector.load %arg6[%c0_1, %c0_2] : memref<8x256xf32, #tpu.memory_space<vmem>>, vector<8x256xf32>
    %c0_3 = arith.constant 0 : index
    %c0_4 = arith.constant 0 : index
    %8 = vector.load %arg3[%c0_3, %c0_4] : memref<128x256xbf16, #tpu.memory_space<vmem>>, vector<128x256xbf16>
    %cst = arith.constant dense<0.000000e+00> : vector<8x256xf32>
    %9 = tpu.matmul %6, %8, %cst {dimension_numbers = #tpu.dot_dimension_numbers<[1], [0], [0], [1], [0, 0, 1, 1], [], []>} : vector<8x128xbf16>, vector<128x256xbf16>, vector<8x256xf32> -> vector<8x256xf32>
    %10 = arith.addf %7, %9 : vector<8x256xf32>
    %c0_5 = arith.constant 0 : index
    %c0_6 = arith.constant 0 : index
    %11 = vector.load %arg6[%c0_5, %c0_6] : memref<8x256xf32, #tpu.memory_space<vmem>>, vector<8x256xf32>
    tpu.vector_store %arg6[%c0_5, %c0_6], %10 {strides = array<i32>} : memref<8x256xf32, #tpu.memory_space<vmem>>, vector<8x256xf32>,
    %c0_i32_7 = arith.constant 0 : i32
    %12 = arith.cmpi eq, %arg1, %c0_i32_7 : i32
    %13 = arith.extui %12 : i1 to i32
    %c0_i32_8 = arith.constant 0 : i32
    %14 = arith.cmpi ne, %13, %c0_i32_8 : i32
    scf.if %14 {
      %c0_9 = arith.constant 0 : index
      %c0_10 = arith.constant 0 : index
      %15 = vector.load %arg6[%c0_9, %c0_10] : memref<8x256xf32, #tpu.memory_space<vmem>>, vector<8x256xf32>
      %c0_11 = arith.constant 0 : index
      %c0_12 = arith.constant 0 : index
      %16 = vector.load %arg4[%c0_11, %c0_12] : memref<8x128xf32, #tpu.memory_space<vmem>>, vector<8x128xf32>
      %17 = vector.extract_strided_slice %16 {offsets = [0, 0], sizes = [1, 128], strides = [1, 1]} : vector<8x128xf32> to vector<1x128xf32>
      %18 = vector.extract_strided_slice %16 {offsets = [1, 0], sizes = [1, 128], strides = [1, 1]} : vector<8x128xf32> to vector<1x128xf32>
      %19 = vector.extract_strided_slice %16 {offsets = [2, 0], sizes = [1, 128], strides = [1, 1]} : vector<8x128xf32> to vector<1x128xf32>
      %20 = vector.extract_strided_slice %16 {offsets = [3, 0], sizes = [1, 128], strides = [1, 1]} : vector<8x128xf32> to vector<1x128xf32>
      %21 = vector.extract_strided_slice %15 {offsets = [0, 0], sizes = [8, 128], strides = [1, 1]} : vector<8x256xf32> to vector<8x128xf32>
      %22 = vector.broadcast %17 : vector<1x128xf32> to vector<8x128xf32>
      %23 = arith.addf %21, %22 : vector<8x128xf32>
      %24 = vector.extract_strided_slice %15 {offsets = [0, 128], sizes = [8, 128], strides = [1, 1]} : vector<8x256xf32> to vector<8x128xf32>
      %25 = vector.broadcast %20 : vector<1x128xf32> to vector<8x128xf32>
      %26 = arith.mulf %24, %25 : vector<8x128xf32>
      %cst_13 = arith.constant 5.000000e-01 : f32
      %27 = vector.broadcast %cst_13 : f32 to vector<8x128xf32>
      %28 = arith.mulf %27, %23 : vector<8x128xf32>
      %cst_14 = arith.constant 0.707106769 : f32
      %29 = vector.broadcast %cst_14 : f32 to vector<8x128xf32>
      %30 = arith.mulf %23, %29 : vector<8x128xf32>
      %31 = math.erf %30 : vector<8x128xf32>
      %cst_15 = arith.constant 1.000000e+00 : f32
      %32 = vector.broadcast %cst_15 : f32 to vector<8x128xf32>
      %33 = arith.addf %32, %31 : vector<8x128xf32>
      %34 = arith.mulf %28, %33 : vector<8x128xf32>
      %cst_16 = arith.constant dense<0.000000e+00> : vector<128xf32>
      %35 = vector.multi_reduction <add>, %34, %cst_16 [0] : vector<8x128xf32> to vector<128xf32>
      %36 = vector.shape_cast %35 : vector<128xf32> to vector<1x128xf32>
      %cst_17 = arith.constant 1.250000e-01 : f32
      %37 = vector.broadcast %cst_17 : f32 to vector<1x128xf32>
      %38 = arith.mulf %36, %37 : vector<1x128xf32>
      %39 = vector.broadcast %38 : vector<1x128xf32> to vector<8x128xf32>
      %40 = arith.subf %34, %39 : vector<8x128xf32>
      %41 = arith.mulf %40, %40 : vector<8x128xf32>
      %cst_18 = arith.constant dense<0.000000e+00> : vector<128xf32>
      %42 = vector.multi_reduction <add>, %41, %cst_18 [0] : vector<8x128xf32> to vector<128xf32>
      %43 = vector.shape_cast %42 : vector<128xf32> to vector<1x128xf32>
      %cst_19 = arith.constant 1.250000e-01 : f32
      %44 = vector.broadcast %cst_19 : f32 to vector<1x128xf32>
      %45 = arith.mulf %43, %44 : vector<1x128xf32>
      %cst_20 = arith.constant 9.99999974E-6 : f32
      %46 = vector.broadcast %cst_20 : f32 to vector<1x128xf32>
      %47 = arith.addf %45, %46 : vector<1x128xf32>
      %48 = math.rsqrt %47 : vector<1x128xf32>
      %49 = vector.broadcast %48 : vector<1x128xf32> to vector<8x128xf32>
      %50 = arith.mulf %40, %49 : vector<8x128xf32>
      %51 = vector.broadcast %18 : vector<1x128xf32> to vector<8x128xf32>
      %52 = arith.mulf %50, %51 : vector<8x128xf32>
      %53 = vector.broadcast %19 : vector<1x128xf32> to vector<8x128xf32>
      %54 = arith.addf %52, %53 : vector<8x128xf32>
      %cst_21 = arith.constant 1.000000e+00 : f32
      %55 = vector.broadcast %cst_21 : f32 to vector<8x128xf32>
      %56 = arith.mulf %55, %26 : vector<8x128xf32>
      %57 = arith.addf %54, %56 : vector<8x128xf32>
      %c0_22 = arith.constant 0 : index
      %c0_23 = arith.constant 0 : index
      %58 = vector.load %arg5[%c0_22, %c0_23] : memref<8x128xf32, #tpu.memory_space<vmem>>, vector<8x128xf32>
      tpu.vector_store %arg5[%c0_22, %c0_23], %57 {strides = array<i32>} : memref<8x128xf32, #tpu.memory_space<vmem>>, vector<8x128xf32>,
    } else {
    }
    return
  }
  func.func @transform_0(%arg0: i32, %arg1: i32) -> (i32, i32) {
    %c0_i32 = arith.constant 0 : i32
    %c0_i32_0 = arith.constant 0 : i32
    %c0_i32_1 = arith.constant 0 : i32
    return %c0_i32, %c0_i32_0 : i32, i32
  }
  func.func @transform_1(%arg0: i32, %arg1: i32) -> (i32, i32) {
    %c0_i32 = arith.constant 0 : i32
    return %arg1, %arg0 : i32, i32
  }
  func.func @transform_2(%arg0: i32, %arg1: i32) -> (i32, i32) {
    %c0_i32 = arith.constant 0 : i32
    %c0_i32_0 = arith.constant 0 : i32
    return %c0_i32, %arg0 : i32, i32
  }
  func.func @transform_3(%arg0: i32, %arg1: i32) -> (i32, i32) {
    %c0_i32 = arith.constant 0 : i32
    %c0_i32_0 = arith.constant 0 : i32
    return %c0_i32, %arg0 : i32, i32
  }
}

</mosaic_0001>

<bundles_post_ra>
// kernel: tpu_custom_call.1
= control target key start
LH: loop header
LB: loop body
LE: loop exit
PB: predicated region body
PF: predicated region fallthrough
CT: control target
= control target key end

     0   :  { %8 = vsyncpa [#allocation4], 0  ;;  %s454_s0 = inlined_call_operand.hbm [shape: bf16[8,128], index: 0, kind: input, shape index: {}]   ;;  %s455_s1 = inlined_call_operand.hbm [shape: bf16[128,256], index: 1, kind: input, shape index: {}]   ;;  %s456_s2 = inlined_call_operand.hbm [shape: f32[8,128], index: 2, kind: input, shape index: {}]   ;;  %s457_s3 = inlined_call_operand.hbm [shape: f32[8,128], index: 3, kind: output, shape index: {}]  }
   0x1   :  { %9 = vsyncpa [#allocation7], 0 }
   0x2   :  { %10 = vsyncpa [#allocation5], 0  ;;  %s415_s12 = smov [#allocation6]  }
   0x3   :  { %s26_s13 = sshll.u32 %s415_s12, 4  ;;  %s27_s13 = int_to_ptr.vmem [resolvable:$true] %s26_s13 }
   0x4   :  { %s337_s14 = scalar_lea.vmem %s27_s13, 2048  ;;  %p342_p1 = scmp.lt.s32.totalorder %s27_s13, %s27_s13 }
   0x5   :  { %p338_p0 = scmp.ne.s32.totalorder %s27_s13, %s337_s14  ;;  %p343_p2 = scmp.lt.s32.totalorder %s337_s14, %s337_s14 }
   0x7   :  { %p344_p3 = por %p343_p2, %p342_p1 }
   0x9   :  { %p345_p4 = pnand %p344_p3, %p338_p0 }
   0xb   :  { %348 = shalt.err (!%p345_p4)
}
   0xc   :  { %s416_s15 = smov 128   ;;  %s417_s16 = smov 8  }
   0xd   :  { %32 = dma.hbm_to_vmem [thread:$0]  %s455_s1, 2048, %s27_s13, [#allocation7], %s416_s15, %s416_s15, %s417_s16  }
   0xe   :  { %s418_s19 = smov [#allocation3]   ;;  %s419_s21 = smov [#allocation8]  }
   0xf   :  { %s17_s20 = sshll.u32 %s418_s19, 4  ;;  %s39_s22 = sshll.u32 %s419_s21, 4  ;;  %s18_s20 = int_to_ptr.vmem [resolvable:$true] %s17_s20  ;;  %s40_s22 = int_to_ptr.vmem [resolvable:$true] %s39_s22 }
  0x10   :  { %s357_s23 = scalar_lea.vmem %s18_s20, 64  ;;  %p362_p6 = scmp.lt.s32.totalorder %s18_s20, %s18_s20 }
  0x11   :  { %p358_p5 = scmp.ne.s32.totalorder %s18_s20, %s357_s23  ;;  %p363_p7 = scmp.lt.s32.totalorder %s357_s23, %s357_s23 }
  0x13   :  { %p364_p8 = por %p363_p7, %p362_p6 }
  0x15   :  { %p365_p9 = pnand %p364_p8, %p358_p5 }
  0x17   :  { %368 = shalt.err (!%p365_p9)
}
  0x18   :  { %20 = dma.hbm_to_vmem [thread:$0]  %s454_s0, 64, %s18_s20, [#allocation4]  }
  0x19   :  { %s377_s26 = scalar_lea.vmem %s40_s22, 128  ;;  %p382_p11 = scmp.lt.s32.totalorder %s40_s22, %s40_s22 }
  0x1a   :  { %p378_p10 = scmp.ne.s32.totalorder %s40_s22, %s377_s26  ;;  %p383_p12 = scmp.lt.s32.totalorder %s377_s26, %s377_s26 }
  0x1c   :  { %p384_p13 = por %p383_p12, %p382_p11 }
  0x1e   :  { %p385_p0 = pnand %p384_p13, %p378_p10 }
  0x20   :  { %388 = shalt.err (!%p385_p0)
}
  0x21   :  { %42 = dma.hbm_to_vmem [thread:$0]  %s456_s2, 128, %s40_s22, [#allocation7]  }
  0x22   :  { %409 = dma.done.wait [#allocation4], 64  }
  0x23   :  { %410 = vsyncadd [#allocation4], 4294967232 }
  0x24   :  { %411 = dma.done.wait [#allocation7], 2176  }
  0x25   :  { %412 = vsyncadd [#allocation7], 4294965120  ;;  %v420_v0 = vmov 0   ;;  %v301_v1 = vld [vmem:[#allocation6 + $0x74] ss:$8 sps:$4 sm:$0xff]   ;;  %v214_v18 = vlaneseq  ;;  %v213_v21 = vld [vmem:[#allocation8] sm:$0xff] }
  0x26   :  { %195 = vmatprep.mubr.bf16.mxu0 %v420_v0  ;;  %v303_v2 = vld [vmem:[#allocation6 + $0x70] ss:$8 sps:$4 sm:$0xff]   ;;  %163 = vmatprep.subr.bf16.mxu0 %v301_v1  ;;  %v304_v3 = vld [vmem:[#allocation6 + $0x64] ss:$8 sps:$4 sm:$0xff]   ;;  %v306_v4 = vld [vmem:[#allocation6 + $0x60] ss:$8 sps:$4 sm:$0xff]  }
  0x27   :  { %164 = vmatpush1.bf16.msra.mxu0 %v303_v2  ;;  %v307_v5 = vld [vmem:[#allocation6 + $0x54] ss:$8 sps:$4 sm:$0xff]   ;;  %v309_v6 = vld [vmem:[#allocation6 + $0x50] ss:$8 sps:$4 sm:$0xff]   ;;  %v310_v7 = vld [vmem:[#allocation6 + $0x44] ss:$8 sps:$4 sm:$0xff]  }
  0x28   :  { %165 = vmatprep.subr.bf16.mxu0 %v304_v3  ;;  %v312_v8 = vld [vmem:[#allocation6 + $0x40] ss:$8 sps:$4 sm:$0xff]   ;;  %v313_v9 = vld [vmem:[#allocation6 + $0x34] ss:$8 sps:$4 sm:$0xff]   ;;  %v315_v10 = vld [vmem:[#allocation6 + $0x30] ss:$8 sps:$4 sm:$0xff]  }
  0x29   :  { %v316_v11 = vld [vmem:[#allocation6 + $0x24] ss:$8 sps:$4 sm:$0xff]   ;;  %v318_v12 = vld [vmem:[#allocation6 + $0x20] ss:$8 sps:$4 sm:$0xff]   ;;  %v319_v13 = vld [vmem:[#allocation6 + $0x14] ss:$8 sps:$4 sm:$0xff]  }
  0x2a   :  { %v321_v14 = vld [vmem:[#allocation6 + $0x10] ss:$8 sps:$4 sm:$0xff]   ;;  %v322_v15 = vld [vmem:[#allocation6 + $0x4] ss:$8 sps:$4 sm:$0xff]   ;;  %v324_v16 = vld [vmem:[#allocation6] ss:$8 sps:$4 sm:$0xff]  }
  0x2b   :  { %166 = vmatpush1.bf16.msra.mxu0 %v306_v4  ;;  %v64_v17 = vld [vmem:[#allocation3] sm:$0xf]  ;;  %v215_v19 = vshrl.u32 %v214_v18, 7  ;;  %s421_s0 = smov [#allocation9]  }
  0x2c   :  { %167 = vmatprep.subr.bf16.mxu0 %v307_v5  ;;  %s266_s2 = sshll.u32 %s421_s0, 4  ;;  %s267_s2 = int_to_ptr.vmem [resolvable:$true] %s266_s2 }
  0x2d   :  { %v216_v20 = vsub.s32 0, %v215_v19  ;;  %v250_v50 = vsub.s32 1, %v215_v19  ;;  %v221_v51 = vsub.s32 3, %v215_v19  ;;  %v255_v52 = vsub.s32 2, %v215_v19  ;;  %s389_s28 = scalar_lea.vmem %s267_s2, 128  ;;  %p394_p2 = scmp.lt.s32.totalorder %s267_s2, %s267_s2 }
  0x2e   :  { %p390_p1 = scmp.ne.s32.totalorder %s267_s2, %s389_s28  ;;  %p395_p3 = scmp.lt.s32.totalorder %s389_s28, %s389_s28 }
  0x2f   :  { %168 = vmatpush1.bf16.msra.mxu0 %v309_v6  ;;  %v217_v22 = vrot.slane %v213_v21, %v216_v20  ;;  %v251_v53 = vrot.slane %v213_v21, %v250_v50  ;;  %v222_v55 = vrot.slane %v213_v21, %v221_v51  ;;  %v256_v57 = vrot.slane %v213_v21, %v255_v52 }
  0x30   :  { %169 = vmatprep.subr.bf16.mxu0 %v310_v7  ;;  %p396_p4 = por %p395_p3, %p394_p2 }
  0x32   :  { %p397_p5 = pnand %p396_p4, %p390_p1 }
  0x33   :  { %170 = vmatpush1.bf16.msra.mxu0 %v312_v8 }
  0x34   :  { %171 = vmatprep.subr.bf16.mxu0 %v313_v9 }
  0x37   :  { %172 = vmatpush1.bf16.msra.mxu0 %v315_v10 }
  0x38   :  { %173 = vmatprep.subr.bf16.mxu0 %v316_v11 }
  0x3b   :  { %174 = vmatpush1.bf16.msra.mxu0 %v318_v12 }
  0x3c   :  { %175 = vmatprep.subr.bf16.mxu0 %v319_v13 }
  0x3f   :  { %176 = vmatpush1.bf16.msra.mxu0 %v321_v14 }
  0x40   :  { %177 = vmatprep.subr.bf16.mxu0 %v322_v15 }
  0x43   :  { %178 = vmatpush1.bf16.msra.mxu0 %v324_v16 }
  0x46   :  { %196 = vmatmul.mubr.bf16.vlgmr.msra.gmra.mxu0 %v64_v17 }
 0x106   :  { %v197_v23 = vpop.f32.mrf.mxu0 }
 0x107   :  { %v218_v24 = vadd.f32 %v217_v22, %v197_v23 }
 0x108   :  { %v199_v25 = vpop.f32.mrf.mxu0 }
 0x109   :  { %v225_v26 = vmul.f32 0.70710677, %v218_v24  ;;  %v224_v30 = vmul.f32 0.5, %v218_v24  ;;  %v223_v59 = vmul.f32 %v222_v55, %v199_v25 }
 0x10a   :  { %v201_v27 = vpop.f32.mrf.mxu0 }
 0x10b   :  { %325 = verf.f32 %v225_v26 }
 0x10c   :  { %v202_v28 = vpop.f32.mrf.mxu0 }
 0x118   :  { %v326_v29 = vpop.eup %325 }
 0x119   :  { %v227_v31 = vadd.f32 1.0, %v326_v29 }
 0x11b   :  { %v228_v32 = vmul.f32 %v227_v31, %v224_v30 }
 0x11d   :  { %v229_v33 = vrot.slane %v228_v32, 4 }
 0x11f   :  { %v230_v34 = vadd.f32 %v229_v33, %v228_v32 }
 0x121   :  { %v231_v35 = vrot.slane %v230_v34, 2 }
 0x123   :  { %v232_v36 = vadd.f32 %v231_v35, %v230_v34 }
 0x125   :  { %v233_v37 = vrot.slane %v232_v36, 1 }
 0x127   :  { %v234_v38 = vadd.f32 %v233_v37, %v232_v36 }
 0x129   :  { %v235_v39 = vmul.f32 0.125, %v234_v38 }
 0x12b   :  { %v236_v40 = vsub.f32 %v228_v32, %v235_v39 }
 0x12d   :  { %v237_v41 = vmul.f32 %v236_v40, %v236_v40 }
 0x12f   :  { %v238_v42 = vrot.slane %v237_v41, 4 }
 0x131   :  { %v239_v43 = vadd.f32 %v238_v42, %v237_v41 }
 0x133   :  { %v240_v44 = vrot.slane %v239_v43, 2 }
 0x135   :  { %v241_v45 = vadd.f32 %v240_v44, %v239_v43 }
 0x137   :  { %v242_v46 = vrot.slane %v241_v45, 1 }
 0x139   :  { %v243_v47 = vadd.f32 %v242_v46, %v241_v45 }
 0x13b   :  { %v244_v48 = vmul.f32 0.125, %v243_v47 }
 0x13d   :  { %v245_v49 = vadd.f32 1e-05, %v244_v48 }
 0x13f   :  { %327 = vrsqrt.f32 %v245_v49 }
 0x14c   :  { %v328_v54 = vpop.eup %327 }
 0x14d   :  { %v247_v56 = vmul.f32 %v328_v54, %v236_v40 }
 0x14f   :  { %v252_v58 = vmul.f32 %v251_v53, %v247_v56 }
 0x151   :  { %v257_v60 = vadd.f32 %v256_v57, %v252_v58 }
 0x153   :  { %v258_v61 = vadd.f32 %v257_v60, %v223_v59 }
 0x155   :  { %259 = vst [vmem:[#allocation9] sm:$0xff] %v258_v61 }
 0x156   :  { %400 = shalt.err (!%p397_p5)
}
 0x157   :  { %269 = dma.vmem_to_hbm [thread:$0]  %s267_s2, 128, %s457_s3, [#allocation5]  }
 0x158   :  { %413 = dma.done.wait [#allocation5], 128  }
 0x159   :  { %414 = vsyncadd [#allocation5], 4294967168 }
 0x15a   :  { %273 = vsyncpa [#allocation4], 1 }
 0x15b   :  { %274 = vsyncpa [#allocation7], 1 }
 0x15c   :  { %275 = vsyncpa [#allocation5], 1 }

</bundles_post_ra>
